<compile_context>
chip_gen: v6e
topology: v6e:2x2x1
jax: 0.10.0
libtpu: 0.0.40
codegen_flags: <defaults>
</compile_context>

<pallas_src>
import functools

import jax
import jax.numpy as jnp
from jax.experimental import pallas as pl
from jax.experimental.pallas import tpu as pltpu

_LANE = 128      # lane width of the 2D view (full vreg lanes)
_SUBLANE = 8     # f32 sublanes per vreg


def _combined_loss_kernel(pred_ref, true_ref, sumsq_ref, sumhub_ref, *, delta):
    """One (block_rows, 128) tile: accumulate per-vreg partial sums.

    pred_ref/true_ref : (block_rows, 128) VMEM input tiles
    sumsq_ref         : (8, 128) f32 VMEM output accumulator (sum of d^2)
    sumhub_ref        : (8, 128) f32 VMEM output accumulator (sum of huber(d))
    """
    j = pl.program_id(1)

    @pl.when(j == 0)
    def _init():
        sumsq_ref[...] = jnp.zeros_like(sumsq_ref)
        sumhub_ref[...] = jnp.zeros_like(sumhub_ref)

    d = pred_ref[...].astype(jnp.float32) - true_ref[...].astype(jnp.float32)
    sq = d * d
    ad = jnp.abs(d)
    # HuberLoss(delta): 0.5*d^2 if |d| <= delta else delta*(|d| - 0.5*delta)
    hub = jnp.where(ad <= delta, 0.5 * sq, delta * (ad - 0.5 * delta))

    # Reduce only the "which vreg" axis (pure VPU adds, layout-preserving
    # reshape of the sublane-group axis); the expensive cross-lane/sublane
    # reduce happens exactly once, outside the kernel.
    sumsq_ref[...] += jnp.sum(sq.reshape(-1, _SUBLANE, _LANE), axis=0)
    sumhub_ref[...] += jnp.sum(hub.reshape(-1, _SUBLANE, _LANE), axis=0)


def combined_loss(y_pred, y_true, alpha=0.5, delta=1.0, *,
                  block_rows=4096, n_shards=2):
    assert y_pred.shape == y_true.shape, (y_pred.shape, y_true.shape)
    n_elems = int(y_pred.size)

    pred = y_pred.reshape(-1)
    true = y_true.reshape(-1)

    # --- lane-dense, zero-padded (rows, 128) layout ---------------------------
    rows_needed = -(-n_elems // _LANE)
    rows_per_shard = -(-rows_needed // n_shards)
    # Clamp tile height for small inputs; keep a multiple of 8 sublanes.
    br = min(block_rows, max(_SUBLANE, -(-rows_per_shard // _SUBLANE) * _SUBLANE))
    blocks_per_shard = max(1, -(-rows_per_shard // br))
    rows_total = n_shards * blocks_per_shard * br

    pad = rows_total * _LANE - n_elems
    if pad:
        pred = jnp.concatenate([pred, jnp.zeros((pad,), dtype=pred.dtype)])
        true = jnp.concatenate([true, jnp.zeros((pad,), dtype=true.dtype)])
    pred2 = pred.reshape(rows_total, _LANE)
    true2 = true.reshape(rows_total, _LANE)

    kernel = functools.partial(_combined_loss_kernel, delta=float(delta))
    in_map = lambda i, j, bps=blocks_per_shard: (i * bps + j, 0)
    out_map = lambda i, j: (i, 0, 0)

    sum_sq, sum_hub = pl.pallas_call(
        kernel,
        out_shape=(
            jax.ShapeDtypeStruct((n_shards, _SUBLANE, _LANE), jnp.float32),
            jax.ShapeDtypeStruct((n_shards, _SUBLANE, _LANE), jnp.float32),
        ),
        grid_spec=pltpu.PrefetchScalarGridSpec(
            num_scalar_prefetch=0,
            grid=(n_shards, blocks_per_shard),
            in_specs=[
                pl.BlockSpec((br, _LANE), in_map),
                pl.BlockSpec((br, _LANE), in_map),
            ],
            out_specs=[
                pl.BlockSpec((None, _SUBLANE, _LANE), out_map),
                pl.BlockSpec((None, _SUBLANE, _LANE), out_map),
            ],
        ),
        compiler_params=pltpu.CompilerParams(
            # Shard rows across TensorCores (v7x has 2; harmless on v5e/v6e),
            # run each shard's row-tile reduction sequentially.
            dimension_semantics=("parallel", "arbitrary"),
            vmem_limit_bytes=32 * 1024 * 1024,
        ),
    )(pred2, true2)

    # Tiny epilogue: one cross-lane reduce per accumulator + scalar combine.
    inv_n = 1.0 / n_elems
    mse = jnp.sum(sum_sq) * inv_n
    huber = jnp.sum(sum_hub) * inv_n
    return alpha * mse + (1.0 - alpha) * huber * 100.0


def combined_loss_ref(y_pred, y_true, alpha=0.5, delta=1.0):
    d = y_pred.astype(jnp.float32) - y_true.astype(jnp.float32)
    mse = jnp.mean(d * d)
    ad = jnp.abs(d)
    hub = jnp.mean(jnp.where(ad <= delta, 0.5 * d * d, delta * (ad - 0.5 * delta)))
    return alpha * mse + (1.0 - alpha) * hub * 100.0


if __name__ == "__main__":
    key = jax.random.PRNGKey(0)
    k1, k2, k3, k4 = jax.random.split(key, 4)

    # LSTM-style prediction/target tensors: batch=2, seq=8, hidden=32 (f32).
    y_pred = jax.random.normal(k1, (2, 8, 32), dtype=jnp.float32)
    y_true = jax.random.normal(k2, (2, 8, 32), dtype=jnp.float32)
    loss = jax.block_until_ready(combined_loss(y_pred, y_true, alpha=0.5))
    ref = combined_loss_ref(y_pred, y_true, alpha=0.5)
    assert jnp.allclose(loss, ref, rtol=1e-5, atol=1e-5), (loss, ref)

    # Second check: bf16 inputs, multiple row tiles per shard (exercises the
    # accumulation across the "arbitrary" grid axis).
    yp2 = jax.random.normal(k3, (4, 64, 48), dtype=jnp.bfloat16)
    yt2 = jax.random.normal(k4, (4, 64, 48), dtype=jnp.bfloat16)
    loss2 = jax.block_until_ready(combined_loss(yp2, yt2, alpha=0.5, block_rows=16))
    ref2 = combined_loss_ref(yp2, yt2, alpha=0.5)
    assert jnp.allclose(loss2, ref2, rtol=1e-4, atol=1e-4), (loss2, ref2)

    print("KERNEL_OK")
</pallas_src>

<mosaic_0001>
module attributes {stable_mosaic.version = 11 : i64} {
  func.func @_combined_loss_kernel(%arg0: i32, %arg1: i32, %arg2: memref<8x128xf32, #tpu.memory_space<vmem>>, %arg3: memref<8x128xf32, #tpu.memory_space<vmem>>, %arg4: memref<1x8x128xf32, #tpu.memory_space<vmem>>, %arg5: memref<1x8x128xf32, #tpu.memory_space<vmem>>) attributes {dimension_semantics = [#tpu.dimension_semantics<parallel>, #tpu.dimension_semantics<arbitrary>], iteration_bounds = array<i64: 2, 1>, scalar_prefetch = 0 : i64, scratch_operands = 0 : i64, tpu.core_type = #tpu.core_type<tc>, window_params = [{transform_indices = @transform_0, window_bounds = array<i64: 8, 128>}, {transform_indices = @transform_1, window_bounds = array<i64: 8, 128>}, {transform_indices = @transform_2, window_bounds = array<i64: 1, 8, 128>}, {transform_indices = @transform_3, window_bounds = array<i64: 1, 8, 128>}]} {
    %c0_i32 = arith.constant 0 : i32
    %0 = arith.cmpi eq, %arg1, %c0_i32 : i32
    %1 = arith.extui %0 : i1 to i32
    %c0_i32_0 = arith.constant 0 : i32
    %2 = arith.cmpi ne, %1, %c0_i32_0 : i32
    scf.if %2 {
      %cst_21 = arith.constant 0.000000e+00 : f32
      %33 = vector.broadcast %cst_21 : f32 to vector<8x128xf32>
      %c0_22 = arith.constant 0 : index
      %c0_23 = arith.constant 0 : index
      %c0_24 = arith.constant 0 : index
      %34 = vector.load %arg4[%c0_22, %c0_23, %c0_24] : memref<1x8x128xf32, #tpu.memory_space<vmem>>, vector<1x8x128xf32>
      %35 = vector.shape_cast %34 : vector<1x8x128xf32> to vector<8x128xf32>
      %36 = vector.shape_cast %33 : vector<8x128xf32> to vector<1x8x128xf32>
      tpu.vector_store %arg4[%c0_22, %c0_23, %c0_24], %36 {strides = array<i32>} : memref<1x8x128xf32, #tpu.memory_space<vmem>>, vector<1x8x128xf32>,
      %cst_25 = arith.constant 0.000000e+00 : f32
      %37 = vector.broadcast %cst_25 : f32 to vector<8x128xf32>
      %c0_26 = arith.constant 0 : index
      %c0_27 = arith.constant 0 : index
      %c0_28 = arith.constant 0 : index
      %38 = vector.load %arg5[%c0_26, %c0_27, %c0_28] : memref<1x8x128xf32, #tpu.memory_space<vmem>>, vector<1x8x128xf32>
      %39 = vector.shape_cast %38 : vector<1x8x128xf32> to vector<8x128xf32>
      %40 = vector.shape_cast %37 : vector<8x128xf32> to vector<1x8x128xf32>
      tpu.vector_store %arg5[%c0_26, %c0_27, %c0_28], %40 {strides = array<i32>} : memref<1x8x128xf32, #tpu.memory_space<vmem>>, vector<1x8x128xf32>,
    } else {
    }
    %c0 = arith.constant 0 : index
    %c0_1 = arith.constant 0 : index
    %3 = vector.load %arg2[%c0, %c0_1] : memref<8x128xf32, #tpu.memory_space<vmem>>, vector<8x128xf32>
    %c0_2 = arith.constant 0 : index
    %c0_3 = arith.constant 0 : index
    %4 = vector.load %arg3[%c0_2, %c0_3] : memref<8x128xf32, #tpu.memory_space<vmem>>, vector<8x128xf32>
    %5 = arith.subf %3, %4 : vector<8x128xf32>
    %6 = arith.mulf %5, %5 : vector<8x128xf32>
    %7 = math.absf %5 : vector<8x128xf32>
    %cst = arith.constant 1.000000e+00 : f32
    %8 = vector.broadcast %cst : f32 to vector<8x128xf32>
    %9 = arith.cmpf ole, %7, %8 : vector<8x128xf32>
    %cst_4 = arith.constant 5.000000e-01 : f32
    %10 = vector.broadcast %cst_4 : f32 to vector<8x128xf32>
    %11 = arith.mulf %10, %6 : vector<8x128xf32>
    %cst_5 = arith.constant 5.000000e-01 : f32
    %12 = vector.broadcast %cst_5 : f32 to vector<8x128xf32>
    %13 = arith.subf %7, %12 : vector<8x128xf32>
    %cst_6 = arith.constant 1.000000e+00 : f32
    %14 = vector.broadcast %cst_6 : f32 to vector<8x128xf32>
    %15 = arith.mulf %14, %13 : vector<8x128xf32>
    %16 = arith.select %9, %11, %15 : vector<8x128xi1>, vector<8x128xf32>
    %c0_7 = arith.constant 0 : index
    %c0_8 = arith.constant 0 : index
    %c0_9 = arith.constant 0 : index
    %17 = vector.load %arg4[%c0_7, %c0_8, %c0_9] : memref<1x8x128xf32, #tpu.memory_space<vmem>>, vector<1x8x128xf32>
    %18 = vector.shape_cast %17 : vector<1x8x128xf32> to vector<8x128xf32>
    %19 = vector.shape_cast %6 : vector<8x128xf32> to vector<1x8x128xf32>
    %cst_10 = arith.constant dense<0.000000e+00> : vector<8x128xf32>
    %20 = vector.multi_reduction <add>, %19, %cst_10 [0] : vector<1x8x128xf32> to vector<8x128xf32>
    %21 = arith.addf %18, %20 : vector<8x128xf32>
    %c0_11 = arith.constant 0 : index
    %c0_12 = arith.constant 0 : index
    %c0_13 = arith.constant 0 : index
    %22 = vector.load %arg4[%c0_11, %c0_12, %c0_13] : memref<1x8x128xf32, #tpu.memory_space<vmem>>, vector<1x8x128xf32>
    %23 = vector.shape_cast %22 : vector<1x8x128xf32> to vector<8x128xf32>
    %24 = vector.shape_cast %21 : vector<8x128xf32> to vector<1x8x128xf32>
    tpu.vector_store %arg4[%c0_11, %c0_12, %c0_13], %24 {strides = array<i32>} : memref<1x8x128xf32, #tpu.memory_space<vmem>>, vector<1x8x128xf32>,
    %c0_14 = arith.constant 0 : index
    %c0_15 = arith.constant 0 : index
    %c0_16 = arith.constant 0 : index
    %25 = vector.load %arg5[%c0_14, %c0_15, %c0_16] : memref<1x8x128xf32, #tpu.memory_space<vmem>>, vector<1x8x128xf32>
    %26 = vector.shape_cast %25 : vector<1x8x128xf32> to vector<8x128xf32>
    %27 = vector.shape_cast %16 : vector<8x128xf32> to vector<1x8x128xf32>
    %cst_17 = arith.constant dense<0.000000e+00> : vector<8x128xf32>
    %28 = vector.multi_reduction <add>, %27, %cst_17 [0] : vector<1x8x128xf32> to vector<8x128xf32>
    %29 = arith.addf %26, %28 : vector<8x128xf32>
    %c0_18 = arith.constant 0 : index
    %c0_19 = arith.constant 0 : index
    %c0_20 = arith.constant 0 : index
    %30 = vector.load %arg5[%c0_18, %c0_19, %c0_20] : memref<1x8x128xf32, #tpu.memory_space<vmem>>, vector<1x8x128xf32>
    %31 = vector.shape_cast %30 : vector<1x8x128xf32> to vector<8x128xf32>
    %32 = vector.shape_cast %29 : vector<8x128xf32> to vector<1x8x128xf32>
    tpu.vector_store %arg5[%c0_18, %c0_19, %c0_20], %32 {strides = array<i32>} : memref<1x8x128xf32, #tpu.memory_space<vmem>>, vector<1x8x128xf32>,
    return
  }
  func.func @transform_0(%arg0: i32, %arg1: i32) -> (i32, i32) {
    %c1_i32 = arith.constant 1 : i32
    %0 = arith.muli %arg0, %c1_i32 : i32
    %1 = arith.addi %0, %arg1 : i32
    %c0_i32 = arith.constant 0 : i32
    %c0_i32_0 = arith.constant 0 : i32
    return %1, %c0_i32 : i32, i32
  }
  func.func @transform_1(%arg0: i32, %arg1: i32) -> (i32, i32) {
    %c1_i32 = arith.constant 1 : i32
    %0 = arith.muli %arg0, %c1_i32 : i32
    %1 = arith.addi %0, %arg1 : i32
    %c0_i32 = arith.constant 0 : i32
    %c0_i32_0 = arith.constant 0 : i32
    return %1, %c0_i32 : i32, i32
  }
  func.func @transform_2(%arg0: i32, %arg1: i32) -> (i32, i32, i32) {
    %c0_i32 = arith.constant 0 : i32
    %c0_i32_0 = arith.constant 0 : i32
    %c0_i32_1 = arith.constant 0 : i32
    return %arg0, %c0_i32, %c0_i32_0 : i32, i32, i32
  }
  func.func @transform_3(%arg0: i32, %arg1: i32) -> (i32, i32, i32) {
    %c0_i32 = arith.constant 0 : i32
    %c0_i32_0 = arith.constant 0 : i32
    %c0_i32_1 = arith.constant 0 : i32
    return %arg0, %c0_i32, %c0_i32_0 : i32, i32, i32
  }
}

</mosaic_0001>

<bundles_post_ra>
// kernel: tpu_custom_call.1
= control target key start
LH: loop header
LB: loop body
LE: loop exit
PB: predicated region body
PF: predicated region fallthrough
CT: control target
= control target key end

     0   :  { %9 = vsyncpa [#allocation3], 0  ;;  %s950_s0 = inlined_call_operand.hbm [shape: f32[16,128], index: 0, kind: input, shape index: {}]   ;;  %s951_s1 = inlined_call_operand.hbm [shape: f32[16,128], index: 1, kind: input, shape index: {}]   ;;  %s952_s2 = inlined_call_operand.hbm [shape: f32[2,8,128], index: 2, kind: output, shape index: {0}]   ;;  %s953_s3 = inlined_call_operand.hbm [shape: f32[2,8,128], index: 3, kind: output, shape index: {1}]  }
   0x1   :  { %11 = vsyncpa [#allocation3 + $0x1], 0 }
   0x2   :  { %12 = vsyncpa [#allocation6], 0 }
   0x3   :  { %14 = vsyncpa [#allocation6 + $0x1], 0 }
   0x4   :  { %15 = vsyncpa [#allocation4], 0 }
   0x5   :  { %17 = vsyncpa [#allocation4 + $0x1], 0 }
   0x6   :  { %18 = vsyncpa [#allocation9], 0 }
   0x7   :  { %20 = vsyncpa [#allocation9 + $0x1], 0  ;;  %s733_s12 = smov 0   ;;  %s735_s13 = smov 0  }
   0x8   :  { %s737_s14 = smov 0   ;;  %s739_s15 = smov 0  }
   0x9   :  { %s741_s16 = smov 0   ;;  %s743_s17 = smov 0  }
   0xa LB: > { %s444_s18 = sadd.s32 4294967295, %s707_s17   ;;  %s445_s19 = sadd.s32 4294967294, %s707_s17   ;;  %s707_s17 = sphi %s743_s17, %s26_s17   ;;  %s703_s16 = sphi %s741_s16, %s967_s16   ;;  %s699_s15 = sphi %s739_s15, %s966_s15   ;;  %s695_s14 = sphi %s737_s14, %s965_s14   ;;  %s691_s13 = sphi %s735_s13, %s964_s13   ;;  %s687_s12 = sphi %s733_s12, %s963_s12  }
   0xb   : > { %s38_s20 = sadd.s32 1, %s703_s16  ;;  %s47_s21 = sadd.s32 1, %s695_s14 }
   0xc   : > { %p40_p0 = scmp.ge.s32.totalorder %s38_s20, 2  ;;  %p54_p1 = scmp.ne.s32.totalorder %s695_s14, %s691_s13 }
   0xd   : > { %p55_p2 = scmp.eq.s32.totalorder %s707_s17, 0  ;;  %p60_p3 = scmp.ne.s32.totalorder %s691_s13, %s687_s12 }
   0xe   : > { %s969_s20 = smov (%p40_p0, %s38_s20), 0  ;;  %p61_p5 = scmp.eq.s32.totalorder %s444_s18, 0 }
   0xf   : > { %p774_p4 = por %p55_p2, %p54_p1  ;;  %s44_s23 = ssub.s32 %s703_s16, %s969_s20 }
  0x10   : > { %p112_p6 = scmp.eq.s32.totalorder %s444_s18, 1  ;;  %p45_p7 = scmp.eq.s32.totalorder %s44_s23, 0 }
  0x11   : > { %p780_p8 = por %p61_p5, %p60_p3  ;;  %p118_p10 = scmp.eq.s32.totalorder %s445_s19, 1 }
  0x12   : > { %p784_p9 = por %p112_p6, %p54_p1  ;;  %p486_p13 = scmp.lt.s32.totalorder %s707_s17, 2 }
  0x13   : > { %s789_s26 = scalar_select %p45_p7, %s695_s14, %s47_s21  }
  0x14   : > { %p791_p11 = por %p118_p10, %p60_p3  ;;  %s798_s28 = sand.u32 1, %s695_s14  }
  0x15   : > { %s448_s29 = sshll.u32 %s798_s28, 3  ;;  %s449_s30 = sshll.u32 %s703_s16, 7 }
  0x16   : > { %s174_s6 = scalar_lea.hbm %s950_s0, %s449_s30  ;;  %s168_s7 = scalar_lea.vmem [#allocation2], %s448_s29 }
  0x17   : > { %s176_s8 = sshll.u32 %s168_s7, 4  ;;  %p807_p0 = pnand %p486_p13, %p774_p4  ;;  %s177_s8 = int_to_ptr.vmem [resolvable:$true] %s176_s8 }
  0x18   : > { %p452_p1 = scmp.ge.s32.totalorder %s707_s17, 1  ;;  %p200_p2 = scmp.lt.s32.totalorder %s707_s17, 3 }
  0x19   : > { %s165_s10 = scalar_lea.sflag [#allocation3], %s798_s28  ;;  %p539_p3 = pneg %p807_p0 }
  0x1a   : > { %s550_s11 = scalar_lea.vmem %s177_s8, 128  ;;  %s709_s18 = smov [#allocation2]  }
  0x1b   : > { %p551_p5 = scmp.ne.s32.totalorder %s177_s8, %s550_s11  ;;  %s555_s19 = sshll.u32 %s709_s18, 4  ;;  %s556_s19 = int_to_ptr.vmem [resolvable:$false] %s555_s19 }
  0x1c   : > { %s557_s21 = scalar_lea.vmem %s556_s19, 256  ;;  %p558_p4 = scmp.lt.s32.totalorder %s177_s8, %s556_s19 }
  0x1d   : > { %p553_p6 = pnand %p551_p5, %p539_p3  ;;  %p559_p10 = scmp.lt.s32.totalorder %s557_s21, %s550_s11 }
  0x1f   : > { %p554_p7 = pneg %p553_p6  ;;  %p560_p13 = por %p559_p10, %p558_p4 }
  0x21   : > { %p561_p12 = pnand %p560_p13, %p554_p7 }
  0x23   : > { %564 = shalt.err (!%p561_p12)
}
  0x24   : > { %475 = dma.hbm_to_vmem [thread:$0]  (!%p807_p0), %s174_s6, 128, %s177_s8, %s165_s10  }
  0x25   : > { %p825_p5 = pnand %p452_p1, %p200_p2  ;;  %s193_s5 = scalar_lea.hbm %s951_s1, %s449_s30 }
  0x26   : > { %s187_s7 = scalar_lea.vmem [#allocation5], %s448_s29  ;;  %s184_s18 = scalar_lea.sflag [#allocation6], %s798_s28 }
  0x27   : > { %s195_s11 = sshll.u32 %s187_s7, 4  ;;  %s710_s6 = smov [#allocation5]   ;;  %s196_s11 = int_to_ptr.vmem [resolvable:$true] %s195_s11 }
  0x28   : > { %s578_s19 = scalar_lea.vmem %s196_s11, 128  ;;  %s583_s8 = sshll.u32 %s710_s6, 4  ;;  %s584_s8 = int_to_ptr.vmem [resolvable:$false] %s583_s8 }
  0x29   : > { %p579_p12 = scmp.ne.s32.totalorder %s196_s11, %s578_s19  ;;  %s585_s10 = scalar_lea.vmem %s584_s8, 256 }
  0x2a   : > { %p586_p1 = scmp.lt.s32.totalorder %s196_s11, %s584_s8  ;;  %p587_p2 = scmp.lt.s32.totalorder %s585_s10, %s578_s19 }
  0x2b   : > { %p581_p6 = pnand %p579_p12, %p539_p3 }
  0x2c   : > { %p588_p4 = por %p587_p2, %p586_p1 }
  0x2d   : > { %p582_p7 = pneg %p581_p6 }
  0x2f   : > { %p589_p10 = pnand %p588_p4, %p582_p7 }
  0x31   : > { %592 = shalt.err (!%p589_p10)
}
  0x32   : > { %478 = dma.hbm_to_vmem [thread:$0]  (!%p807_p0), %s193_s5, 128, %s196_s11, %s184_s18  }
  0x33   : > { %204 = sbr.rel (%p825_p5) target bundleno = 106 (0x6a), region = 28  ;;  %s841_s28 = sand.u32 (!%p825_p5), 1, %s691_s13  }
  0x34   : > { %s844_s29 = sshll.u32 (!%p825_p5), %s841_s28, 3  ;;  %s207_s30 = scalar_lea.sflag (!%p825_p5), [#allocation3], %s841_s28 }
  0x35   : > { %s210_s21 = scalar_lea.vmem (!%p825_p5), [#allocation2], %s844_s29 }
  0x38   : > { %670 = dma.done.wait (%p780_p8), %s207_s30, 128  }
  0x39   : > { %672 = vsyncadd (%p780_p8), %s207_s30, 4294967168  ;;  %s216_s9 = scalar_lea.sflag [#allocation6], %s841_s28  ;;  %s219_s22 = scalar_lea.vmem [#allocation5], %s844_s29 }
  0x3a   : > { %674 = dma.done.wait (%p780_p8), %s216_s9, 128  }
  0x3b   : > { %676 = vsyncadd (%p780_p8), %s216_s9, 4294967168  ;;  %v260_v0 = vld [vmem:[%s210_s21] sm:$0xff]  ;;  %v261_v1 = vld [vmem:[%s219_s22] sm:$0xff]  ;;  %s460_s23 = sshll.u32 %s699_s15, 7  ;;  %s244_s4 = scalar_lea.vmem [#allocation7], %s844_s29 }
  0x3c   : > { %v262_v2 = vsub.f32 %v260_v0, %v261_v1  ;;  %s296_s5 = sshll.u32 %s244_s4, 4  ;;  %s251_s7 = scalar_lea.vmem [#allocation8], %s844_s29  ;;  %s872_s5 = int_to_ptr.vmem [resolvable:$true] %s296_s5 }
  0x3d   : > { %s309_s11 = sshll.u32 %s251_s7, 4  ;;  %s870_s19 = scalar_lea.hbm %s952_s2, %s460_s23  ;;  %s881_s11 = int_to_ptr.vmem [resolvable:$true] %s309_s11 }
  0x3e   : > { %v263_v3 = vmul.f32 %v262_v2, %v262_v2  ;;  %v264_v4 = vand.u32 2147483647, %v262_v2  ;;  %s879_s8 = scalar_lea.hbm %s953_s3, %s460_s23  ;;  %s278_s10 = scalar_lea.sflag [#allocation4], %s841_s28 }
  0x3f   : > { %s593_s30 = scalar_lea.vmem %s872_s5, 128  ;;  %s711_s21 = smov [#allocation7]  }
  0x40   : > { %v266_v5 = vmul.f32 0.5, %v263_v3  ;;  %vm863_vm0 = vcmp.le.f32.partialorder %v264_v4, 1.0  ;;  %v457_v7 = vadd.f32 -0.5, %v264_v4  ;;  %272 = vst [vmem:[%s244_s4] sm:$0xff] %v263_v3  ;;  %p594_p8 = scmp.ne.s32.totalorder %s872_s5, %s593_s30  ;;  %s597_s9 = sshll.u32 %s711_s21, 4  ;;  %s598_s9 = int_to_ptr.vmem [resolvable:$false] %s597_s9 }
  0x41   : > { %s599_s22 = scalar_lea.vmem %s598_s9, 256  ;;  %p600_p13 = scmp.lt.s32.totalorder %s872_s5, %s598_s9 }
  0x42   : > { %v268_v8 = vsel %vm863_vm0, %v266_v5, %v457_v7  ;;  %p595_p0 = pnand %p594_p8, %p784_p9  ;;  %p601_p5 = scmp.lt.s32.totalorder %s599_s22, %s593_s30 }
  0x44   : > { %p596_p3 = pneg %p595_p0  ;;  %p602_p12 = por %p601_p5, %p600_p13 }
  0x46   : > { %p603_p6 = pnand %p602_p12, %p596_p3 }
  0x48   : > { %606 = shalt.err (!%p603_p6)
}
  0x49   : > { %s607_s23 = scalar_lea.hbm %s870_s19, 128  ;;  %s611_s18 = scalar_lea.hbm %s952_s2, 256 }
  0x4a   : > { %p608_p7 = scmp.ne.s32.totalorder %s870_s19, %s607_s23  ;;  %p612_p4 = scmp.lt.s32.totalorder %s870_s19, %s952_s2 }
  0x4b   : > { %p613_p10 = scmp.lt.s32.totalorder %s611_s18, %s607_s23 }
  0x4c   : > { %p609_p1 = pnand %p608_p7, %p784_p9 }
  0x4d   : > { %p614_p8 = por %p613_p10, %p612_p4 }
  0x4e   : > { %p610_p2 = pneg %p609_p1 }
  0x50   : > { %p615_p0 = pnand %p614_p8, %p610_p2 }
  0x52   : > { %618 = shalt.err (!%p615_p0)
}
  0x53   : > { %468 = dma.vmem_to_hbm [thread:$0]  (%p784_p9), %s872_s5, 128, %s870_s19, %s278_s10   ;;  %276 = vst [vmem:[%s251_s7] sm:$0xff] %v268_v8 }
  0x54   : > { %s283_s30 = scalar_lea.sflag [#allocation9], %s841_s28  ;;  %s619_s21 = scalar_lea.vmem %s881_s11, 128 }
  0x55   : > { %p620_p3 = scmp.ne.s32.totalorder %s881_s11, %s619_s21  ;;  %s712_s9 = smov [#allocation8]  }
  0x56   : > { %s623_s22 = sshll.u32 %s712_s9, 4  ;;  %s624_s22 = int_to_ptr.vmem [resolvable:$false] %s623_s22 }
  0x57   : > { %p621_p13 = pnand %p620_p3, %p784_p9  ;;  %s625_s23 = scalar_lea.vmem %s624_s22, 256 }
  0x58   : > { %p626_p12 = scmp.lt.s32.totalorder %s881_s11, %s624_s22  ;;  %p627_p6 = scmp.lt.s32.totalorder %s625_s23, %s619_s21 }
  0x59   : > { %p622_p5 = pneg %p621_p13 }
  0x5a   : > { %p628_p7 = por %p627_p6, %p626_p12 }
  0x5c   : > { %p629_p1 = pnand %p628_p7, %p622_p5 }
  0x5e   : > { %632 = shalt.err (!%p629_p1)
}
  0x5f   : > { %s633_s29 = scalar_lea.hbm %s879_s8, 128  ;;  %s637_s7 = scalar_lea.hbm %s953_s3, 256 }
  0x60   : > { %p634_p2 = scmp.ne.s32.totalorder %s879_s8, %s633_s29  ;;  %p638_p8 = scmp.lt.s32.totalorder %s879_s8, %s953_s3 }
  0x61   : > { %p639_p0 = scmp.lt.s32.totalorder %s637_s7, %s633_s29 }
  0x62   : > { %p635_p4 = pnand %p634_p2, %p784_p9 }
  0x63   : > { %p640_p3 = por %p639_p0, %p638_p8 }
  0x64   : > { %p636_p10 = pneg %p635_p4 }
  0x66   : > { %p641_p13 = pnand %p640_p3, %p636_p10 }
  0x68   : > { %644 = shalt.err (!%p641_p13)
}
  0x69   : > { %469 = dma.vmem_to_hbm [thread:$0]  (%p784_p9), %s881_s11, 128, %s879_s8, %s283_s30  }
  0x6a PF: > { %s321_s4 = sand.u32 1, %s687_s12   ;;  %p962_p5 = scmp.ge.s32.totalorder %s707_s17, 2 }
  0x6b   : > { %s322_s24 = scalar_lea.sflag [#allocation4], %s321_s4 }
  0x6c   : > { %p480_p12 = pnand %p962_p5, %p791_p11 }
  0x6e   : > { %p481_p6 = pneg %p480_p12 }
  0x70   : > { %678 = dma.done.wait (%p481_p6), %s322_s24, 128  }
  0x71   : > { %680 = vsyncadd (%p481_p6), %s322_s24, 4294967168  ;;  %s331_s18 = scalar_lea.sflag [#allocation9], %s321_s4 }
  0x72   : > { %682 = dma.done.wait (%p481_p6), %s331_s18, 128  }
  0x73   : > { %684 = vsyncadd (%p481_p6), %s331_s18, 4294967168  ;;  %s26_s17 = sadd.s32 1, %s707_s17   ;;  %s963_s12 = smov %s691_s13 }
  0x74   : > { %p23_p7 = scmp.ge.s32.totalorder %s26_s17, 4   ;;  %s964_s13 = smov %s695_s14 }
  0x75   : > { %s965_s14 = smov %s789_s26  ;;  %s966_s15 = smov %s703_s16 }
  0x76   : > { %s967_s16 = smov %s969_s20  ;;  %25 = sbr.rel (!%p23_p7) target bundleno = 10 (0xa), region = 107 }
  0x7b   :  { %336 = vsyncpa [#allocation3], 1 }
  0x7c   :  { %338 = vsyncpa [#allocation3 + $0x1], 1 }
  0x7d   :  { %339 = vsyncpa [#allocation6], 1 }
  0x7e   :  { %341 = vsyncpa [#allocation6 + $0x1], 1 }
  0x7f   :  { %342 = vsyncpa [#allocation4], 1 }
  0x80   :  { %344 = vsyncpa [#allocation4 + $0x1], 1 }
  0x81   :  { %345 = vsyncpa [#allocation9], 1 }
  0x82   :  { %347 = vsyncpa [#allocation9 + $0x1], 1 }

</bundles_post_ra>
